<compile_context>
chip_gen: v7x
topology: tpu7x:2x2x1
jax: 0.10.0
libtpu: 0.0.40
codegen_flags: <defaults>
</compile_context>

<pallas_src>
import jax
import jax.numpy as jnp
from jax.experimental import pallas as pl
from jax.experimental.pallas import tpu as pltpu

EPS = 1e-6


def sublayer_connection_kernel(x_ref, w_ref, bias_ref, o_ref):
    # x_ref: (tm, D)  w_ref: (D, tn) bf16  bias_ref: (1, tn)  o_ref: (tm, tn)
    x = x_ref[...].astype(jnp.float32)                       # (tm, D)
    d = x.shape[-1]

    # LayerNorm stats (torch semantics: unbiased std, eps added to std).
    mean = jnp.mean(x, axis=-1, keepdims=True)
    diff = x - mean
    var = jnp.sum(diff * diff, axis=-1, keepdims=True) * (1.0 / (d - 1))
    inv = pl.reciprocal(jnp.sqrt(var) + EPS, approx=True)    # EUP slot, ~free
    xhat = diff * inv                                         # (tm, D)

    # sublayer Linear on the MXU (a_2 folded into W', b_2/bias folded into bias').
    y = jnp.dot(xhat.astype(jnp.bfloat16), w_ref[...],
                preferred_element_type=jnp.float32)           # (tm, tn)

    tn = o_ref.shape[-1]
    if tn == d:                                               # untiled-N fast path
        x_res = x
    else:                                                     # column-tiled weight
        start = pl.multiple_of(pl.program_id(1) * tn, 128)
        x_res = x_ref[:, pl.ds(start, tn)].astype(jnp.float32)

    # dropout (eval mode) -> identity; residual add with folded bias.
    o_ref[...] = (x_res + y + bias_ref[...]).astype(o_ref.dtype)


def _round_down8(n):
    return (n // 8) * 8


def sublayer_connection(x, a_2, b_2, w, bias):
    """Fused pre-norm residual block. x: (B,S,D) f32; a_2/b_2/bias: (D,); w: (D,D)."""
    B, S, D = x.shape
    rows = B * S
    x2 = x.reshape(rows, D)

    # ---- Fold LayerNorm affine into the sublayer weights (one-time O(D^2)) ----
    #   (a_2*xhat + b_2) @ W + bias  ==  xhat @ (a_2[:,None]*W) + (b_2 @ W + bias)
    w32 = w.astype(jnp.float32)
    w_folded = (a_2.astype(jnp.float32)[:, None] * w32).astype(jnp.bfloat16)
    bias_folded = (b_2.astype(jnp.float32) @ w32 + bias.astype(jnp.float32)).reshape(1, D)

    # ---- Per-generation VMEM budget (v5e/v6e: 128 MiB, v7x: 64 MiB) ----
    try:
        vmem_cap = pltpu.get_tpu_info().vmem_capacity_bytes
    except Exception:
        vmem_cap = 64 << 20                                   # conservative fallback
    budget = max(vmem_cap - (16 << 20), 24 << 20)             # headroom for compiler scratch

    # ---- Column tiling of W: only when the bf16 weight is large vs. budget ----
    if D * D * 2 <= budget // 3:
        tn, n_col = D, 1
    else:
        tn_target = max(256, ((budget // 6) // (D * 2)) // 256 * 256)
        tn = None
        t = (min(tn_target, D) // 128) * 128
        while t >= 128:                                        # lane-aligned divisor of D
            if D % t == 0:
                tn = t
                break
            t -= 128
        if tn is None:
            tn, n_col = D, 1                                   # exotic D: keep untiled
        else:
            n_col = D // tn

    # ---- Row tile sized from the real VMEM budget ----
    w_buffers = 1 if n_col == 1 else 2                         # invariant W -> 1 buffer
    w_resident = D * tn * 2 * w_buffers + 2 * tn * 4           # weight slabs + bias
    per_row = 4 * (4 * D + 2 * tn)                             # x(2x) + out(2x) + f32 scratch
    tm_fit = max(8, _round_down8((budget - w_resident) // per_row))
    tm_cap = max(8, _round_down8((16 << 20) // (D * 4)))       # <= ~16 MiB of x per step
    tm = min(tm_fit, tm_cap)
    if tm >= rows:
        tm = rows                                              # single row block
    n_row = pl.cdiv(rows, tm)                                  # ragged last block is masked

    est = w_resident + per_row * tm + (2 << 20)
    vmem_limit = int(min(max(est, 32 << 20), vmem_cap - (8 << 20)))

    x_spec = pl.BlockSpec((tm, D), lambda i, j: (i, 0))
    if n_col == 1:
        # Grid-invariant operands: single buffer (halves resident weight VMEM).
        w_spec = pl.BlockSpec((D, tn), lambda i, j: (0, j), pipeline_mode=pl.Buffered(1))
        b_spec = pl.BlockSpec((1, tn), lambda i, j: (0, j), pipeline_mode=pl.Buffered(1))
    else:
        w_spec = pl.BlockSpec((D, tn), lambda i, j: (0, j))
        b_spec = pl.BlockSpec((1, tn), lambda i, j: (0, j))
    o_spec = pl.BlockSpec((tm, tn), lambda i, j: (i, j))

    out = pl.pallas_call(
        sublayer_connection_kernel,
        out_shape=jax.ShapeDtypeStruct((rows, D), x.dtype),
        grid_spec=pltpu.PrefetchScalarGridSpec(
            num_scalar_prefetch=0,
            grid=(n_row, n_col),
            in_specs=[x_spec, w_spec, b_spec],
            out_specs=o_spec,
        ),
        compiler_params=pltpu.CompilerParams(
            dimension_semantics=("parallel", "parallel"),
            vmem_limit_bytes=vmem_limit),
    )(x2, w_folded, bias_folded)

    return out.reshape(B, S, D)


if __name__ == "__main__":
    B, S, D = 2, 8, 128   # size = D = 128 features

    key = jax.random.PRNGKey(0)
    kx, kw, kb = jax.random.split(key, 3)

    x = jax.random.normal(kx, (B, S, D), dtype=jnp.float32)

    # LayerNorm params as in __init__: ones / zeros
    a_2 = jnp.ones((D,), dtype=jnp.float32)
    b_2 = jnp.zeros((D,), dtype=jnp.float32)

    # Deterministic synthetic sublayer (Linear D->D)
    w = jax.random.normal(kw, (D, D), dtype=jnp.float32) * 0.02
    bias = jax.random.normal(kb, (D,), dtype=jnp.float32) * 0.02

    out = sublayer_connection(x, a_2, b_2, w, bias)
    jax.block_until_ready(out)
    print("KERNEL_OK")
</pallas_src>

<mosaic_0001>
module attributes {stable_mosaic.version = 11 : i64} {
  func.func @sublayer_connection_kernel(%arg0: i32, %arg1: i32, %arg2: memref<16x128xf32, #tpu.memory_space<vmem>>, %arg3: memref<128x128xbf16, #tpu.memory_space<vmem>>, %arg4: memref<1x128xf32, #tpu.memory_space<vmem>>, %arg5: memref<16x128xf32, #tpu.memory_space<vmem>>) attributes {dimension_semantics = [#tpu.dimension_semantics<parallel>, #tpu.dimension_semantics<parallel>], iteration_bounds = array<i64: 1, 1>, scalar_prefetch = 0 : i64, scratch_operands = 0 : i64, tpu.core_type = #tpu.core_type<tc>, window_params = [{transform_indices = @transform_0, window_bounds = array<i64: 16, 128>}, {pipeline_mode = #tpu.pipeline_mode<synchronous>, transform_indices = @transform_1, window_bounds = array<i64: 128, 128>}, {pipeline_mode = #tpu.pipeline_mode<synchronous>, transform_indices = @transform_2, window_bounds = array<i64: 1, 128>}, {transform_indices = @transform_3, window_bounds = array<i64: 16, 128>}]} {
    %c0 = arith.constant 0 : index
    %c0_0 = arith.constant 0 : index
    %0 = vector.load %arg2[%c0, %c0_0] : memref<16x128xf32, #tpu.memory_space<vmem>>, vector<16x128xf32>
    %cst = arith.constant dense<0.000000e+00> : vector<16xf32>
    %1 = vector.multi_reduction <add>, %0, %cst [1] : vector<16x128xf32> to vector<16xf32>
    %2 = vector.shape_cast %1 : vector<16xf32> to vector<16x1xf32>
    %cst_1 = arith.constant 1.280000e+02 : f32
    %3 = vector.broadcast %cst_1 : f32 to vector<16x1xf32>
    %4 = arith.divf %2, %3 : vector<16x1xf32>
    %5 = vector.broadcast %4 : vector<16x1xf32> to vector<16x128xf32>
    %6 = arith.subf %0, %5 : vector<16x128xf32>
    %7 = arith.mulf %6, %6 : vector<16x128xf32>
    %cst_2 = arith.constant dense<0.000000e+00> : vector<16xf32>
    %8 = vector.multi_reduction <add>, %7, %cst_2 [1] : vector<16x128xf32> to vector<16xf32>
    %9 = vector.shape_cast %8 : vector<16xf32> to vector<16x1xf32>
    %cst_3 = arith.constant 0.00787401571 : f32
    %10 = vector.broadcast %cst_3 : f32 to vector<16x1xf32>
    %11 = arith.mulf %9, %10 : vector<16x1xf32>
    %12 = math.sqrt %11 : vector<16x1xf32>
    %cst_4 = arith.constant 9.99999997E-7 : f32
    %13 = vector.broadcast %cst_4 : f32 to vector<16x1xf32>
    %14 = arith.addf %12, %13 : vector<16x1xf32>
    %15 = tpu.reciprocal %14 {approx = true} : vector<16x1xf32> -> vector<16x1xf32>
    %16 = vector.broadcast %15 : vector<16x1xf32> to vector<16x128xf32>
    %17 = arith.mulf %6, %16 : vector<16x128xf32>
    %18 = arith.truncf %17 : vector<16x128xf32> to vector<16x128xbf16>
    %c0_5 = arith.constant 0 : index
    %c0_6 = arith.constant 0 : index
    %19 = vector.load %arg3[%c0_5, %c0_6] : memref<128x128xbf16, #tpu.memory_space<vmem>>, vector<128x128xbf16>
    %cst_7 = arith.constant dense<0.000000e+00> : vector<16x128xf32>
    %20 = tpu.matmul %18, %19, %cst_7 {dimension_numbers = #tpu.dot_dimension_numbers<[1], [0], [0], [1], [0, 0, 1, 1], [], []>} : vector<16x128xbf16>, vector<128x128xbf16>, vector<16x128xf32> -> vector<16x128xf32>
    %21 = arith.addf %0, %20 : vector<16x128xf32>
    %c0_8 = arith.constant 0 : index
    %c0_9 = arith.constant 0 : index
    %22 = vector.load %arg4[%c0_8, %c0_9] : memref<1x128xf32, #tpu.memory_space<vmem>>, vector<1x128xf32>
    %23 = vector.broadcast %22 : vector<1x128xf32> to vector<16x128xf32>
    %24 = arith.addf %21, %23 : vector<16x128xf32>
    %c0_10 = arith.constant 0 : index
    %c0_11 = arith.constant 0 : index
    %25 = vector.load %arg5[%c0_10, %c0_11] : memref<16x128xf32, #tpu.memory_space<vmem>>, vector<16x128xf32>
    tpu.vector_store %arg5[%c0_10, %c0_11], %24 {strides = array<i32>} : memref<16x128xf32, #tpu.memory_space<vmem>>, vector<16x128xf32>,
    return
  }
  func.func @transform_0(%arg0: i32, %arg1: i32) -> (i32, i32) {
    %c0_i32 = arith.constant 0 : i32
    %c0_i32_0 = arith.constant 0 : i32
    return %arg0, %c0_i32 : i32, i32
  }
  func.func @transform_1(%arg0: i32, %arg1: i32) -> (i32, i32) {
    %c0_i32 = arith.constant 0 : i32
    %c0_i32_0 = arith.constant 0 : i32
    return %c0_i32, %arg1 : i32, i32
  }
  func.func @transform_2(%arg0: i32, %arg1: i32) -> (i32, i32) {
    %c0_i32 = arith.constant 0 : i32
    %c0_i32_0 = arith.constant 0 : i32
    return %c0_i32, %arg1 : i32, i32
  }
  func.func @transform_3(%arg0: i32, %arg1: i32) -> (i32, i32) {
    %c0_i32 = arith.constant 0 : i32
    return %arg0, %arg1 : i32, i32
  }
}

</mosaic_0001>

<bundles_post_ra>
// kernel: tpu_custom_call.1
= control target key start
LH: loop header
LB: loop body
LE: loop exit
PB: predicated region body
PF: predicated region fallthrough
CT: control target
= control target key end

     0   :  { %8 = vsyncpa [#allocation3], 0  ;;  %s439_s0 = inlined_call_operand.hbm [shape: f32[16,128], index: 0, kind: input, shape index: {}]   ;;  %s440_s1 = inlined_call_operand.hbm [shape: bf16[128,128], index: 1, kind: input, shape index: {}]   ;;  %s441_s2 = inlined_call_operand.vmem [shape: f32[1,128], index: 2, kind: input, shape index: {}]   ;;  %s442_s3 = inlined_call_operand.hbm [shape: f32[16,128], index: 3, kind: output, shape index: {}]  }
   0x1   :  { %9 = vsyncpa [#allocation6], 0 }
   0x2   :  { %10 = vsyncpa [#allocation4], 0  ;;  %s355_s12 = smov [#allocation2]   ;;  %s283_s16 = scalar_lea.hbm %s439_s0, 256 }
   0x3   :  { %s16_s13 = sshll.u32 %s355_s12, 4  ;;  %p284_p0 = scmp.ne.s32.totalorder %s439_s0, %s283_s16  ;;  %s17_s13 = int_to_ptr.vmem [resolvable:$true] %s16_s13 }
   0x4   :  { %p287_p1 = scmp.lt.u32.totalorder %s283_s16, %s439_s0 }
   0x6   :  { %p289_p2 = pnand %p287_p1, %p284_p0 }
   0x8   :  { %292 = shalt.err (!%p289_p2)
}
   0x9   :  { %s293_s21 = scalar_lea.vmem %s17_s13, 256  ;;  %p298_p4 = scmp.lt.s32.totalorder %s17_s13, %s17_s13 }
   0xa   :  { %p294_p3 = scmp.ne.s32.totalorder %s17_s13, %s293_s21  ;;  %p299_p5 = scmp.lt.s32.totalorder %s293_s21, %s293_s21 }
   0xc   :  { %p300_p6 = por %p299_p5, %p298_p4 }
   0xe   :  { %p301_p7 = pnand %p300_p6, %p294_p3 }
  0x10   :  { %304 = shalt.err (!%p301_p7)
}
  0x11   :  { %s356_s22 = smov 128   ;;  %s357_s23 = smov 8  }
  0x12   :  { %22 = dma.hbm_to_vmem [thread:$0]  %s439_s0, 256, %s17_s13, [#allocation3], %s356_s22, %s356_s22, %s357_s23  }
  0x13   :  { %s358_s26 = smov [#allocation5]   ;;  %s305_s30 = scalar_lea.hbm %s440_s1, 1024 }
  0x14   :  { %s28_s27 = sshll.u32 %s358_s26, 4  ;;  %p306_p8 = scmp.ne.s32.totalorder %s440_s1, %s305_s30  ;;  %s29_s27 = int_to_ptr.vmem [resolvable:$true] %s28_s27 }
  0x15   :  { %p309_p9 = scmp.lt.u32.totalorder %s305_s30, %s440_s1 }
  0x17   :  { %p311_p10 = pnand %p309_p9, %p306_p8 }
  0x19   :  { %314 = shalt.err (!%p311_p10)
}
  0x1a   :  { %s315_s8 = scalar_lea.vmem %s29_s27, 1024  ;;  %p320_p12 = scmp.lt.s32.totalorder %s29_s27, %s29_s27 }
  0x1b   :  { %p316_p11 = scmp.ne.s32.totalorder %s29_s27, %s315_s8  ;;  %p321_p13 = scmp.lt.s32.totalorder %s315_s8, %s315_s8 }
  0x1d   :  { %p322_p0 = por %p321_p13, %p320_p12 }
  0x1f   :  { %p323_p1 = pnand %p322_p0, %p316_p11 }
  0x21   :  { %326 = shalt.err (!%p323_p1)
}
  0x22   :  { %s359_s0 = smov 64   ;;  %s360_s9 = smov 4  }
  0x23   :  { %34 = dma.hbm_to_vmem [thread:$0]  %s440_s1, 1024, %s29_s27, [#allocation6], %s359_s0, %s359_s0, %s360_s9  }
  0x24   :  { %349 = dma.done.wait [#allocation3], 256  }
  0x25   :  { %350 = vsyncadd [#allocation3], 4294967040 }
  0x26   :  { %351 = dma.done.wait [#allocation6], 1024  }
  0x27   :  { %352 = vsyncadd [#allocation6], 4294966272  ;;  %v411_v0 = vld [vmem:[#allocation2] sm:$0xff]  ;;  %v413_v1 = vld [vmem:[#allocation2 + $0x8] sm:$0xff]  ;;  %v361_v11 = vmov 0.0   ;;  %vm362_vm0 = vmmov 0  }
  0x28   :  { %46 = vadd.xlane.f32.xlu0 %v411_v0  ;;  %v267_v10 = vld [vmem:[#allocation5] sm:$0xff]   ;;  %238 = vmatprep.subr.bf16.mxu0 %v361_v11  ;;  %v268_v12 = vld [vmem:[#allocation5 + $0x8] sm:$0xff]   ;;  %v269_v13 = vld [vmem:[#allocation5 + $0x10] sm:$0xff]   ;;  %s363_s13 = smov [#allocation7]  }
  0x29   :  { %239 = vmatpush3.bf16.msra.mxu0 %v267_v10  ;;  %v270_v14 = vld [vmem:[#allocation5 + $0x18] sm:$0xff]   ;;  %v271_v15 = vld [vmem:[#allocation5 + $0x20] sm:$0xff]   ;;  %254 = vmatprep.mubr.msk.bf16.mxu0 %vm362_vm0, %v361_v11  ;;  %v272_v16 = vld [vmem:[#allocation5 + $0x28] sm:$0xff]   ;;  %s207_s14 = sshll.u32 %s363_s13, 4  ;;  %s208_s14 = int_to_ptr.vmem [resolvable:$true] %s207_s14 }
  0x2a   :  { %240 = vmatprep.subr.bf16.mxu0 %v361_v11  ;;  %v273_v17 = vld [vmem:[#allocation5 + $0x30] sm:$0xff]   ;;  %v274_v18 = vld [vmem:[#allocation5 + $0x38] sm:$0xff]   ;;  %s327_s15 = scalar_lea.vmem %s208_s14, 256  ;;  %p332_p3 = scmp.lt.s32.totalorder %s208_s14, %s208_s14 }
  0x2b   :  { %v228_v41 = vld [vmem:[%s441_s2] ss:$0 sm:$0xff]  ;;  %p328_p2 = scmp.ne.s32.totalorder %s208_s14, %s327_s15  ;;  %p333_p4 = scmp.lt.s32.totalorder %s327_s15, %s327_s15 }
  0x2c   :  { %48 = vadd.xlane.f32.xlu0 %v413_v1 }
  0x2d   :  { %241 = vmatpush3.bf16.msra.mxu0 %v268_v12  ;;  %p334_p5 = por %p333_p4, %p332_p3 }
  0x2e   :  { %242 = vmatprep.subr.bf16.mxu0 %v361_v11 }
  0x2f   :  { %p335_p6 = pnand %p334_p5, %p328_p2 }
  0x31   :  { %243 = vmatpush3.bf16.msra.mxu0 %v269_v13 }
  0x32   :  { %244 = vmatprep.subr.bf16.mxu0 %v361_v11 }
  0x35   :  { %245 = vmatpush3.bf16.msra.mxu0 %v270_v14 }
  0x36   :  { %246 = vmatprep.subr.bf16.mxu0 %v361_v11 }
  0x39   :  { %247 = vmatpush3.bf16.msra.mxu0 %v271_v15 }
  0x3a   :  { %248 = vmatprep.subr.bf16.mxu0 %v361_v11 }
  0x3d   :  { %249 = vmatpush3.bf16.msra.mxu0 %v272_v16 }
  0x3e   :  { %250 = vmatprep.subr.bf16.mxu0 %v361_v11 }
  0x41   :  { %251 = vmatpush3.bf16.msra.mxu0 %v273_v17 }
  0x42   :  { %252 = vmatprep.subr.bf16.mxu0 %v361_v11 }
  0x45   :  { %253 = vmatpush3.bf16.msra.mxu0 %v274_v18 }
  0xb5   :  { %v47_v2 = vpop.xlane.xlu0 %46 }
  0xb6   :  { %v51_v3 = vmul.f32 0.0078125, %v47_v2 }
  0xb8   :  { %v53_v4 = vsub.f32 %v411_v0, %v51_v3 }
  0xb9   :  { %v49_v5 = vpop.xlane.xlu0 %48 }
  0xba   :  { %v52_v6 = vmul.f32 0.0078125, %v49_v5  ;;  %v55_v7 = vmul.f32 %v53_v4, %v53_v4 }
  0xbc   :  { %v54_v8 = vsub.f32 %v413_v1, %v52_v6  ;;  %57 = vadd.xlane.f32.xlu1 %v55_v7 }
  0xbe   :  { %v56_v9 = vmul.f32 %v54_v8, %v54_v8 }
  0xc0   :  { %59 = vadd.xlane.f32.xlu1 %v56_v9 }
 0x149   :  { %v58_v19 = vpop.xlane.xlu1 %57 }
 0x14a   :  { %v61_v20 = vmul.f32 0.007874016, %v58_v19 }
 0x14c   :  { %275 = vrsqrt.f32 %v61_v20  ;;  %vm65_vm1 = vcmp.eq.f32.partialorder %v61_v20, inf  ;;  %v68_v25 = vand.u32 2147483648, %v61_v20  ;;  %vm67_vm2 = vcmp.eq.f32.partialorder %v61_v20, 0.0 }
 0x14d   :  { %v60_v21 = vpop.xlane.xlu1 %59 }
 0x14e   :  { %v62_v22 = vmul.f32 0.007874016, %v60_v21 }
 0x150   :  { %277 = vrsqrt.f32 %v62_v22  ;;  %vm72_vm3 = vcmp.eq.f32.partialorder %v62_v22, inf  ;;  %v75_v31 = vand.u32 2147483648, %v62_v22  ;;  %vm74_vm4 = vcmp.eq.f32.partialorder %v62_v22, 0.0 }
 0x156   :  { %v276_v23 = vpop.eup %275 }
 0x157   :  { %v64_v24 = vmul.f32 %v276_v23, %v61_v20 }
 0x159   :  { %v66_v26 = vsel %vm65_vm1, %v61_v20, %v64_v24 }
 0x15a   :  { %v278_v27 = vpop.eup %277  ;;  %v69_v28 = vsel %vm67_vm2, %v68_v25, %v66_v26 }
 0x15b   :  { %v71_v29 = vmul.f32 %v278_v27, %v62_v22  ;;  %v77_v30 = vadd.f32 1e-06, %v69_v28 }
 0x15d   :  { %v73_v32 = vsel %vm72_vm3, %v62_v22, %v71_v29  ;;  %279 = vrcp.f32 %v77_v30 }
 0x15e   :  { %v76_v33 = vsel %vm74_vm4, %v75_v31, %v73_v32 }
 0x15f   :  { %v78_v34 = vadd.f32 1e-06, %v76_v33 }
 0x161   :  { %281 = vrcp.f32 %v78_v34 }
 0x167   :  { %v280_v35 = vpop.eup %279 }
 0x168   :  { %v81_v37 = vmul.f32 %v280_v35, %v53_v4 }
 0x16b   :  { %v282_v36 = vpop.eup %281 }
 0x16c   :  { %v82_v38 = vmul.f32 %v282_v36, %v54_v8 }
 0x16e   :  { %v83_v39 = vpack.c.bf16 %v82_v38, %v81_v37 }
 0x170   :  { %255 = vmatmul.mubr.bf16.vlgmr.msra.gmra.mrb[0].mxu0 %v83_v39 }
 0x243   :  { %v182_v40 = vpop.f32.mrb[0].mxu0 }
 0x244   :  { %v189_v42 = vadd.f32 %v182_v40, %v411_v0  ;;  %v256_v43 = vpop.f32.mrb[1].mxu0 }
 0x245   :  { %v185_v44 = vpop.f32.mrb[2].mxu0 }
 0x246   :  { %v198_v45 = vadd.f32 %v228_v41, %v189_v42  ;;  %v190_v46 = vadd.f32 %v185_v44, %v413_v1  ;;  %v257_v47 = vpop.f32.mrb[3].mxu0 }
 0x248   :  { %200 = vst [vmem:[#allocation7] sm:$0xff] %v198_v45  ;;  %v199_v48 = vadd.f32 %v228_v41, %v190_v46 }
 0x24a   :  { %201 = vst [vmem:[#allocation7 + $0x8] sm:$0xff] %v199_v48 }
 0x24b   :  { %338 = shalt.err (!%p335_p6)
}
 0x24c   :  { %s339_s17 = scalar_lea.hbm %s442_s3, 256 }
 0x24d   :  { %p340_p7 = scmp.ne.s32.totalorder %s442_s3, %s339_s17  ;;  %p343_p8 = scmp.lt.u32.totalorder %s339_s17, %s442_s3 }
 0x24f   :  { %p345_p9 = pnand %p343_p8, %p340_p7 }
 0x251   :  { %348 = shalt.err (!%p345_p9)
}
 0x252   :  { %213 = dma.vmem_to_hbm [thread:$0]  %s208_s14, 256, %s442_s3, [#allocation4], %s356_s22, %s356_s22, %s357_s23  }
 0x253   :  { %353 = dma.done.wait [#allocation4], 256  }
 0x254   :  { %354 = vsyncadd [#allocation4], 4294967040 }
 0x255   :  { %217 = vsyncpa [#allocation3], 1 }
 0x256   :  { %218 = vsyncpa [#allocation6], 1 }
 0x257   :  { %219 = vsyncpa [#allocation4], 1 }

</bundles_post_ra>
